<compile_context>
chip_gen: v7x
topology: tpu7x:2x2x1
jax: 0.10.0
libtpu: 0.0.40
codegen_flags: <defaults>
</compile_context>

<pallas_src>
import functools

import numpy as np

import jax
import jax.numpy as jnp
from jax import lax
from jax.experimental import pallas as pl
from jax.experimental.pallas import tpu as pltpu


def _down_kernel(x_ref, w_ref, m_ref, o_ref, *, W):
    # x_ref: (Cin_pad, N*HW)   activations, Cin zero-padded to a sublane tile
    # w_ref: (Cout, 9*Cin_pad) fused conv weights, tap-major then in-channel
    # m_ref: (9*Cin_pad, N*HW) static 0/1 boundary masks (they also zero every
    #                          cross-sample / wrap-around element of the rolls)
    # o_ref: (N, Cout, HW)     per-sample lane-dense output slabs
    N, Cout, HW = o_ref.shape
    NHW = x_ref.shape[1]

    x = x_ref[...]  # (Cin_pad, NHW) f32

    # im2col via XLU rotations: tap (dy, dx) needs the flattened plane shifted
    # by s = (dy-1)*W + (dx-1); OOB / wrapped source elements are zeroed by the
    # precomputed mask.  Every tap is a full 8-row slab, so the concatenate is
    # sublane-aligned (no relayout).
    taps = []
    for dy in range(3):
        for dx in range(3):
            s = (dy - 1) * W + (dx - 1)
            taps.append(x if s == 0 else pltpu.roll(x, (-s) % NHW, axis=1))
    patches = jnp.concatenate(taps, axis=0) * m_ref[...]   # (9*Cin_pad, NHW)

    # Single fused MXU contraction over all taps / channels / samples.
    y = jnp.dot(w_ref[...], patches,
                preferred_element_type=jnp.float32)         # (Cout, NHW)

    # Per-sample InstanceNorm2d (affine=False, eps=1e-5) + ReLU on static,
    # lane-aligned HW-lane slices; Dropout(0.5) in eval mode == identity.
    for n in range(N):  # N is tiny and static
        yn = y[:, n * HW:(n + 1) * HW]                       # (Cout, HW)
        mean = jnp.mean(yn, axis=1, keepdims=True)
        c = yn - mean                                        # two-pass variance
        var = jnp.mean(c * c, axis=1, keepdims=True)
        yn = jnp.maximum(c * lax.rsqrt(var + 1e-5), 0.0)
        o_ref[n] = yn.astype(o_ref.dtype)


@jax.jit
def down_forward(x_nchw, w_oihw):
    """Forward pass of `Down`.

    x_nchw : (N, Cin, H, W)    float32
    w_oihw : (Cout, Cin, 3, 3) float32 (PyTorch Conv2d weight layout)
    returns (N, Cout, H, W)    float32
    """
    N, Cin, H, W = x_nchw.shape
    Cout = w_oihw.shape[0]
    HW = H * W
    NHW = N * HW
    CIN_PAD = 8  # full sublane tile

    # Activations: (N, Cin, H, W) -> (Cin_pad, N*HW).  Tiny (8 KiB) relayout so
    # both samples share the lane axis of one kernel invocation.
    x_flat = jnp.transpose(x_nchw.reshape(N, Cin, HW), (1, 0, 2))
    x_pad = jnp.pad(x_flat.reshape(Cin, NHW), ((0, CIN_PAD - Cin), (0, 0)))

    # Weights: (Cout, Cin, 3, 3) -> (Cout, 9*Cin_pad), tap-major (dy, dx) then
    # input channel, zero columns for the padded channels.
    w_t = jnp.transpose(w_oihw, (0, 2, 3, 1))                 # (Cout,3,3,Cin)
    w_t = jnp.pad(w_t, ((0, 0), (0, 0), (0, 0), (0, CIN_PAD - Cin)))
    w_mat = w_t.reshape(Cout, 9 * CIN_PAD)

    # Static per-tap boundary masks, tiled over samples and padded channels.
    rows = np.arange(HW) // W
    cols = np.arange(HW) % W
    mask_taps = []
    for dy in range(3):
        for dx in range(3):
            ry = rows + (dy - 1)
            cx = cols + (dx - 1)
            valid = (ry >= 0) & (ry < H) & (cx >= 0) & (cx < W)
            mask_taps.append(np.tile(valid.astype(np.float32), N))
    mask = np.repeat(np.stack(mask_taps, axis=0), CIN_PAD, axis=0)  # (72, NHW)
    mask = jnp.asarray(mask)

    out = pl.pallas_call(
        functools.partial(_down_kernel, W=W),
        out_shape=jax.ShapeDtypeStruct((N, Cout, HW), jnp.float32),
        grid=(1,),
        in_specs=[
            pl.BlockSpec((CIN_PAD, NHW), lambda i: (0, 0)),
            pl.BlockSpec((Cout, 9 * CIN_PAD), lambda i: (0, 0)),
            pl.BlockSpec((9 * CIN_PAD, NHW), lambda i: (0, 0)),
        ],
        out_specs=pl.BlockSpec((N, Cout, HW), lambda i: (0, 0, 0)),
        compiler_params=pltpu.CompilerParams(
            dimension_semantics=("arbitrary",),
        ),
    )(x_pad, w_mat, mask)

    # (N, Cout, HW) -> (N, Cout, H, W): free, contiguous reshape.
    return out.reshape(N, Cout, H, W)


def reference_forward(x_nchw, w_oihw):
    """Pure-JAX reference (conv + instance norm + relu, eval-mode dropout)."""
    y = lax.conv_general_dilated(
        x_nchw, w_oihw,
        window_strides=(1, 1), padding=((1, 1), (1, 1)),
        dimension_numbers=("NCHW", "OIHW", "NCHW"),
    )
    mean = jnp.mean(y, axis=(2, 3), keepdims=True)
    var = jnp.mean((y - mean) ** 2, axis=(2, 3), keepdims=True)
    y = (y - mean) * lax.rsqrt(var + 1e-5)
    return jnp.maximum(y, 0.0)


if __name__ == "__main__":
    # Small shapes consistent with the module: N=2, Cin=4, Cout=8, H=W=16.
    N, Cin, Cout, H, W = 2, 4, 8, 16, 16

    key = jax.random.PRNGKey(0)
    kx, kw = jax.random.split(key)
    x = jax.random.normal(kx, (N, Cin, H, W), dtype=jnp.float32)
    # Deterministic synthetic conv weights (Kaiming-ish scale).
    w = jax.random.normal(kw, (Cout, Cin, 3, 3), dtype=jnp.float32) * (
        2.0 / (Cin * 9)
    ) ** 0.5

    out = down_forward(x, w)
    out = jax.block_until_ready(out)

    ref = reference_forward(x, w)
    assert out.shape == (N, Cout, H, W)
    assert jnp.allclose(out, ref, atol=1e-4, rtol=1e-4), "mismatch vs reference"

    print("KERNEL_OK")
</pallas_src>

<mosaic_0001>
module attributes {stable_mosaic.version = 11 : i64} {
  func.func @_down_kernel(%arg0: i32, %arg1: memref<8x512xf32, #tpu.memory_space<vmem>>, %arg2: memref<8x72xf32, #tpu.memory_space<vmem>>, %arg3: memref<72x512xf32, #tpu.memory_space<vmem>>, %arg4: memref<2x8x256xf32, #tpu.memory_space<vmem>>) attributes {dimension_semantics = [#tpu.dimension_semantics<arbitrary>], iteration_bounds = array<i64: 1>, scalar_prefetch = 0 : i64, scratch_operands = 0 : i64, tpu.core_type = #tpu.core_type<tc>, window_params = [{pipeline_mode = #tpu.pipeline_mode<synchronous>, transform_indices = @transform_0, window_bounds = array<i64: 8, 512>}, {pipeline_mode = #tpu.pipeline_mode<synchronous>, transform_indices = @transform_1, window_bounds = array<i64: 8, 72>}, {pipeline_mode = #tpu.pipeline_mode<synchronous>, transform_indices = @transform_2, window_bounds = array<i64: 72, 512>}, {pipeline_mode = #tpu.pipeline_mode<synchronous>, transform_indices = @transform_3, window_bounds = array<i64: 2, 8, 256>}]} {
    %c0 = arith.constant 0 : index
    %c0_0 = arith.constant 0 : index
    %0 = vector.load %arg1[%c0, %c0_0] : memref<8x512xf32, #tpu.memory_space<vmem>>, vector<8x512xf32>
    %c17_i32 = arith.constant 17 : i32
    %1 = tpu.dynamic_rotate %0 by %c17_i32 dim 1 : vector<8x512xf32>, i32 -> vector<8x512xf32>
    %c16_i32 = arith.constant 16 : i32
    %2 = tpu.dynamic_rotate %0 by %c16_i32 dim 1 : vector<8x512xf32>, i32 -> vector<8x512xf32>
    %c15_i32 = arith.constant 15 : i32
    %3 = tpu.dynamic_rotate %0 by %c15_i32 dim 1 : vector<8x512xf32>, i32 -> vector<8x512xf32>
    %c1_i32 = arith.constant 1 : i32
    %4 = tpu.dynamic_rotate %0 by %c1_i32 dim 1 : vector<8x512xf32>, i32 -> vector<8x512xf32>
    %c511_i32 = arith.constant 511 : i32
    %5 = tpu.dynamic_rotate %0 by %c511_i32 dim 1 : vector<8x512xf32>, i32 -> vector<8x512xf32>
    %c497_i32 = arith.constant 497 : i32
    %6 = tpu.dynamic_rotate %0 by %c497_i32 dim 1 : vector<8x512xf32>, i32 -> vector<8x512xf32>
    %c496_i32 = arith.constant 496 : i32
    %7 = tpu.dynamic_rotate %0 by %c496_i32 dim 1 : vector<8x512xf32>, i32 -> vector<8x512xf32>
    %c495_i32 = arith.constant 495 : i32
    %8 = tpu.dynamic_rotate %0 by %c495_i32 dim 1 : vector<8x512xf32>, i32 -> vector<8x512xf32>
    %9 = tpu.concatenate %1, %2, %3, %4, %0, %5, %6, %7, %8 in 0 : vector<8x512xf32>, vector<8x512xf32>, vector<8x512xf32>, vector<8x512xf32>, vector<8x512xf32>, vector<8x512xf32>, vector<8x512xf32>, vector<8x512xf32>, vector<8x512xf32> -> vector<72x512xf32>
    %c0_1 = arith.constant 0 : index
    %c0_2 = arith.constant 0 : index
    %10 = vector.load %arg3[%c0_1, %c0_2] : memref<72x512xf32, #tpu.memory_space<vmem>>, vector<72x512xf32>
    %11 = arith.mulf %9, %10 : vector<72x512xf32>
    %c0_3 = arith.constant 0 : index
    %c0_4 = arith.constant 0 : index
    %12 = vector.load %arg2[%c0_3, %c0_4] : memref<8x72xf32, #tpu.memory_space<vmem>>, vector<8x72xf32>
    %cst = arith.constant dense<0.000000e+00> : vector<8x512xf32>
    %13 = tpu.matmul %12, %11, %cst {dimension_numbers = #tpu.dot_dimension_numbers<[1], [0], [0], [1], [0, 0, 1, 1], [], []>} : vector<8x72xf32>, vector<72x512xf32>, vector<8x512xf32> -> vector<8x512xf32>
    %14 = vector.extract_strided_slice %13 {offsets = [0, 0], sizes = [8, 256], strides = [1, 1]} : vector<8x512xf32> to vector<8x256xf32>
    %cst_5 = arith.constant dense<0.000000e+00> : vector<8xf32>
    %15 = vector.multi_reduction <add>, %14, %cst_5 [1] : vector<8x256xf32> to vector<8xf32>
    %16 = vector.shape_cast %15 : vector<8xf32> to vector<8x1xf32>
    %cst_6 = arith.constant 2.560000e+02 : f32
    %17 = vector.broadcast %cst_6 : f32 to vector<8x1xf32>
    %18 = arith.divf %16, %17 : vector<8x1xf32>
    %19 = vector.broadcast %18 : vector<8x1xf32> to vector<8x256xf32>
    %20 = arith.subf %14, %19 : vector<8x256xf32>
    %21 = arith.mulf %20, %20 : vector<8x256xf32>
    %cst_7 = arith.constant dense<0.000000e+00> : vector<8xf32>
    %22 = vector.multi_reduction <add>, %21, %cst_7 [1] : vector<8x256xf32> to vector<8xf32>
    %23 = vector.shape_cast %22 : vector<8xf32> to vector<8x1xf32>
    %cst_8 = arith.constant 2.560000e+02 : f32
    %24 = vector.broadcast %cst_8 : f32 to vector<8x1xf32>
    %25 = arith.divf %23, %24 : vector<8x1xf32>
    %cst_9 = arith.constant 9.99999974E-6 : f32
    %26 = vector.broadcast %cst_9 : f32 to vector<8x1xf32>
    %27 = arith.addf %25, %26 : vector<8x1xf32>
    %28 = math.rsqrt %27 : vector<8x1xf32>
    %29 = vector.broadcast %28 : vector<8x1xf32> to vector<8x256xf32>
    %30 = arith.mulf %20, %29 : vector<8x256xf32>
    %cst_10 = arith.constant 0.000000e+00 : f32
    %31 = vector.broadcast %cst_10 : f32 to vector<8x256xf32>
    %32 = arith.maximumf %30, %31 : vector<8x256xf32>
    %c0_11 = arith.constant 0 : index
    %c0_12 = arith.constant 0 : index
    %c0_13 = arith.constant 0 : index
    %33 = vector.load %arg4[%c0_11, %c0_12, %c0_13] : memref<2x8x256xf32, #tpu.memory_space<vmem>>, vector<1x8x256xf32>
    %34 = vector.shape_cast %33 : vector<1x8x256xf32> to vector<8x256xf32>
    %35 = vector.shape_cast %32 : vector<8x256xf32> to vector<1x8x256xf32>
    tpu.vector_store %arg4[%c0_11, %c0_12, %c0_13], %35 {strides = array<i32>} : memref<2x8x256xf32, #tpu.memory_space<vmem>>, vector<1x8x256xf32>,
    %36 = vector.extract_strided_slice %13 {offsets = [0, 256], sizes = [8, 256], strides = [1, 1]} : vector<8x512xf32> to vector<8x256xf32>
    %cst_14 = arith.constant dense<0.000000e+00> : vector<8xf32>
    %37 = vector.multi_reduction <add>, %36, %cst_14 [1] : vector<8x256xf32> to vector<8xf32>
    %38 = vector.shape_cast %37 : vector<8xf32> to vector<8x1xf32>
    %cst_15 = arith.constant 2.560000e+02 : f32
    %39 = vector.broadcast %cst_15 : f32 to vector<8x1xf32>
    %40 = arith.divf %38, %39 : vector<8x1xf32>
    %41 = vector.broadcast %40 : vector<8x1xf32> to vector<8x256xf32>
    %42 = arith.subf %36, %41 : vector<8x256xf32>
    %43 = arith.mulf %42, %42 : vector<8x256xf32>
    %cst_16 = arith.constant dense<0.000000e+00> : vector<8xf32>
    %44 = vector.multi_reduction <add>, %43, %cst_16 [1] : vector<8x256xf32> to vector<8xf32>
    %45 = vector.shape_cast %44 : vector<8xf32> to vector<8x1xf32>
    %cst_17 = arith.constant 2.560000e+02 : f32
    %46 = vector.broadcast %cst_17 : f32 to vector<8x1xf32>
    %47 = arith.divf %45, %46 : vector<8x1xf32>
    %cst_18 = arith.constant 9.99999974E-6 : f32
    %48 = vector.broadcast %cst_18 : f32 to vector<8x1xf32>
    %49 = arith.addf %47, %48 : vector<8x1xf32>
    %50 = math.rsqrt %49 : vector<8x1xf32>
    %51 = vector.broadcast %50 : vector<8x1xf32> to vector<8x256xf32>
    %52 = arith.mulf %42, %51 : vector<8x256xf32>
    %cst_19 = arith.constant 0.000000e+00 : f32
    %53 = vector.broadcast %cst_19 : f32 to vector<8x256xf32>
    %54 = arith.maximumf %52, %53 : vector<8x256xf32>
    %c1 = arith.constant 1 : index
    %c0_20 = arith.constant 0 : index
    %c0_21 = arith.constant 0 : index
    %55 = vector.load %arg4[%c1, %c0_20, %c0_21] : memref<2x8x256xf32, #tpu.memory_space<vmem>>, vector<1x8x256xf32>
    %56 = vector.shape_cast %55 : vector<1x8x256xf32> to vector<8x256xf32>
    %57 = vector.shape_cast %54 : vector<8x256xf32> to vector<1x8x256xf32>
    tpu.vector_store %arg4[%c1, %c0_20, %c0_21], %57 {strides = array<i32>} : memref<2x8x256xf32, #tpu.memory_space<vmem>>, vector<1x8x256xf32>,
    return
  }
  func.func @transform_0(%arg0: i32) -> (i32, i32) {
    %c0_i32 = arith.constant 0 : i32
    %c0_i32_0 = arith.constant 0 : i32
    %c0_i32_1 = arith.constant 0 : i32
    return %c0_i32, %c0_i32_0 : i32, i32
  }
  func.func @transform_1(%arg0: i32) -> (i32, i32) {
    %c0_i32 = arith.constant 0 : i32
    %c0_i32_0 = arith.constant 0 : i32
    %c0_i32_1 = arith.constant 0 : i32
    return %c0_i32, %c0_i32_0 : i32, i32
  }
  func.func @transform_2(%arg0: i32) -> (i32, i32) {
    %c0_i32 = arith.constant 0 : i32
    %c0_i32_0 = arith.constant 0 : i32
    %c0_i32_1 = arith.constant 0 : i32
    return %c0_i32, %c0_i32_0 : i32, i32
  }
  func.func @transform_3(%arg0: i32) -> (i32, i32, i32) {
    %c0_i32 = arith.constant 0 : i32
    %c0_i32_0 = arith.constant 0 : i32
    %c0_i32_1 = arith.constant 0 : i32
    %c0_i32_2 = arith.constant 0 : i32
    return %c0_i32, %c0_i32_0, %c0_i32_1 : i32, i32, i32
  }
}

</mosaic_0001>

<bundles_post_ra>
// kernel: down_forward.1
= control target key start
LH: loop header
LB: loop body
LE: loop exit
PB: predicated region body
PF: predicated region fallthrough
CT: control target
= control target key end

     0   :  { %s438_s16 = smov 17   ;;  %s439_s21 = smov 16   ;;  %v445_v4 = vmov 0.0   ;;  %v26_v5 = vlaneseq  ;;  %vm197_vm8 = vcmask 588800   ;;  %s712_s0 = inlined_call_operand.vmem [shape: f32[8,512], index: 0, kind: input, shape index: {}]   ;;  %s713_s2 = inlined_call_operand.vmem [shape: f32[72,512], index: 2, kind: input, shape index: {}]   ;;  %s714_s1 = inlined_call_operand.vmem [shape: f32[8,72], index: 1, kind: input, shape index: {}]   ;;  %s715_s3 = inlined_call_operand.vmem [shape: f32[2,8,256], index: 3, kind: output, shape index: {}]  }
   0x1   :  { %v470_v0 = vld [vmem:[%s712_s0 + $0x10] sm:$0xff]  ;;  %v475_v1 = vld [vmem:[%s712_s0] sm:$0xff]  ;;  %v482_v2 = vld [vmem:[%s712_s0 + $0x18] sm:$0xff]  ;;  %s440_s22 = smov 15   ;;  %s442_s23 = smov 127   ;;  %265 = vmatprep.mubr.f32.mxu0 %v445_v4  ;;  %336 = vmatprep.mubr.f32.mxu1 %v445_v4 }
   0x2   :  { %22 = vrot.lane.b32.xlu1 %v470_v0, %s438_s16  ;;  %18 = vrot.lane.b32.xlu0 %v475_v1, %s438_s16  ;;  %v487_v3 = vld [vmem:[%s712_s0 + $0x8] sm:$0xff]  ;;  %s441_s0 = smov 1   ;;  %s443_s24 = smov 113   ;;  %v519_v8 = vand.u32 127, %v26_v5  ;;  %v124_v16 = vld [vmem:[%s713_s2] sm:$0xff] }
   0x3   :  { %s444_s25 = smov 112   ;;  %s446_s26 = smov 111   ;;  %v125_v12 = vld [vmem:[%s713_s2 + $0x8] sm:$0xff]  ;;  %v126_v19 = vld [vmem:[%s713_s2 + $0x10] sm:$0xff]  ;;  %v128_v21 = vld [vmem:[%s713_s2 + $0x20] sm:$0xff] }
   0x4   :  { %vm28_vm0 = vcmp.lt.s32.totalorder %v519_v8, 17  ;;  %vm41_vm1 = vcmp.lt.s32.totalorder %v519_v8, 16  ;;  %v129_v13 = vld [vmem:[%s713_s2 + $0x28] sm:$0xff]  ;;  %v130_v25 = vld [vmem:[%s713_s2 + $0x30] sm:$0xff]  ;;  %v127_v26 = vld [vmem:[%s713_s2 + $0x18] sm:$0xff]  ;;  %vm54_vm2 = vcmp.lt.s32.totalorder %v519_v8, 15 }
   0x5   :  { %v131_v27 = vld [vmem:[%s713_s2 + $0x38] sm:$0xff]  ;;  %vm67_vm3 = vcmp.lt.s32.totalorder %v519_v8, 1  ;;  %v133_v47 = vld [vmem:[%s713_s2 + $0x48] sm:$0xff]  ;;  %v132_v52 = vld [vmem:[%s713_s2 + $0x40] sm:$0xff]  ;;  %vm80_vm4 = vcmp.lt.s32.totalorder %v519_v8, 127  ;;  %vm106_vm5 = vcmp.lt.s32.totalorder %v519_v8, 112 }
   0x6   :  { %24 = vrot.lane.b32.xlu1 %v482_v2, %s438_s16  ;;  %20 = vrot.lane.b32.xlu0 %v487_v3, %s438_s16  ;;  %v137_v49 = vld [vmem:[%s713_s2 + $0x68] sm:$0xff]  ;;  %v134_v56 = vld [vmem:[%s713_s2 + $0x50] sm:$0xff]  ;;  %vm93_vm6 = vcmp.lt.s32.totalorder %v519_v8, 113  ;;  %vm119_vm7 = vcmp.lt.s32.totalorder %v519_v8, 111 }
   0x7   :  { %v135_v57 = vld [vmem:[%s713_s2 + $0x58] sm:$0xff]  ;;  %v136_v61 = vld [vmem:[%s713_s2 + $0x60] sm:$0xff]  ;;  %v138_v62 = vld [vmem:[%s713_s2 + $0x70] sm:$0xff] }
   0x8   :  { %v139_v63 = vld [vmem:[%s713_s2 + $0x78] sm:$0xff] }
   0xa   :  { %35 = vrot.lane.b32.xlu1 %v487_v3, %s439_s21  ;;  %33 = vrot.lane.b32.xlu0 %v475_v1, %s439_s21 }
   0xe   :  { %39 = vrot.lane.b32.xlu1 %v482_v2, %s439_s21  ;;  %37 = vrot.lane.b32.xlu0 %v470_v0, %s439_s21 }
  0x12   :  { %48 = vrot.lane.b32.xlu1 %v487_v3, %s440_s22  ;;  %46 = vrot.lane.b32.xlu0 %v475_v1, %s440_s22 }
  0x16   :  { %52 = vrot.lane.b32.xlu1 %v482_v2, %s440_s22  ;;  %50 = vrot.lane.b32.xlu0 %v470_v0, %s440_s22 }
  0x1a   :  { %61 = vrot.lane.b32.xlu1 %v487_v3, %s441_s0  ;;  %59 = vrot.lane.b32.xlu0 %v475_v1, %s441_s0 }
  0x1e   :  { %65 = vrot.lane.b32.xlu1 %v482_v2, %s441_s0  ;;  %63 = vrot.lane.b32.xlu0 %v470_v0, %s441_s0 }
  0x22   :  { %74 = vrot.lane.b32.xlu1 %v487_v3, %s442_s23  ;;  %72 = vrot.lane.b32.xlu0 %v475_v1, %s442_s23 }
  0x26   :  { %78 = vrot.lane.b32.xlu1 %v482_v2, %s442_s23  ;;  %76 = vrot.lane.b32.xlu0 %v470_v0, %s442_s23 }
  0x2a   :  { %87 = vrot.lane.b32.xlu1 %v487_v3, %s443_s24  ;;  %85 = vrot.lane.b32.xlu0 %v475_v1, %s443_s24 }
  0x2e   :  { %91 = vrot.lane.b32.xlu1 %v482_v2, %s443_s24  ;;  %89 = vrot.lane.b32.xlu0 %v470_v0, %s443_s24 }
  0x32   :  { %100 = vrot.lane.b32.xlu1 %v487_v3, %s444_s25  ;;  %98 = vrot.lane.b32.xlu0 %v475_v1, %s444_s25 }
  0x36   :  { %104 = vrot.lane.b32.xlu1 %v482_v2, %s444_s25  ;;  %102 = vrot.lane.b32.xlu0 %v470_v0, %s444_s25 }
  0x3a   :  { %113 = vrot.lane.b32.xlu1 %v487_v3, %s446_s26  ;;  %111 = vrot.lane.b32.xlu0 %v475_v1, %s446_s26 }
  0x3e   :  { %117 = vrot.lane.b32.xlu1 %v482_v2, %s446_s26  ;;  %115 = vrot.lane.b32.xlu0 %v470_v0, %s446_s26 }
  0x74   :  { %v23_v6 = vpop.permute.xlu1 %22  ;;  %v19_v7 = vpop.permute.xlu0 %18 }
  0x78   :  { %v25_v9 = vpop.permute.xlu1 %24  ;;  %v21_v10 = vpop.permute.xlu0 %20 }
  0x79   :  { %v31_v11 = vsel %vm28_vm0, %v19_v7, %v21_v10  ;;  %v32_v17 = vsel %vm28_vm0, %v25_v9, %v19_v7  ;;  %v30_v20 = vsel %vm28_vm0, %v21_v10, %v23_v6  ;;  %v29_v24 = vsel %vm28_vm0, %v23_v6, %v25_v9 }
  0x7a   :  { %v161_v22 = vmul.f32 %v125_v12, %v31_v11  ;;  %v160_v28 = vmul.f32 %v124_v16, %v32_v17  ;;  %v162_v32 = vmul.f32 %v126_v19, %v30_v20  ;;  %v163_v38 = vmul.f32 %v127_v26, %v29_v24  ;;  %v143_v24 = vld [vmem:[%s713_s2 + $0x98] sm:$0xff]  ;;  %v144_v26 = vld [vmem:[%s713_s2 + $0xa0] sm:$0xff] }
  0x7c   :  { %v36_v14 = vpop.permute.xlu1 %35  ;;  %v34_v15 = vpop.permute.xlu0 %33 }
  0x7d   :  { %v44_v18 = vsel %vm41_vm1, %v34_v15, %v36_v14 }
  0x7e   :  { %v165_v23 = vmul.f32 %v129_v13, %v44_v18 }
  0x80   :  { %v40_v29 = vpop.permute.xlu1 %39  ;;  %v38_v30 = vpop.permute.xlu0 %37  ;;  %v393_v31 = vpack.c.bf16 %v165_v23, %v161_v22  ;;  %v140_v22 = vld [vmem:[%s713_s2 + $0x80] sm:$0xff]  ;;  %v141_v23 = vld [vmem:[%s713_s2 + $0x88] sm:$0xff] }
  0x81   :  { %v45_v33 = vsel %vm41_vm1, %v40_v29, %v34_v15  ;;  %v42_v34 = vsel %vm41_vm1, %v38_v30, %v40_v29  ;;  %v43_v35 = vsel %vm41_vm1, %v36_v14, %v38_v30  ;;  %v145_v29 = vld [vmem:[%s713_s2 + $0xa8] sm:$0xff]  ;;  %v146_v30 = vld [vmem:[%s713_s2 + $0xb0] sm:$0xff] }
  0x82   :  { %v164_v36 = vmul.f32 %v128_v21, %v45_v33  ;;  %v166_v37 = vmul.f32 %v130_v25, %v43_v35  ;;  %394 = vmatprep.subr.bf16.mxu0 %v393_v31  ;;  %v167_v39 = vmul.f32 %v131_v27, %v42_v34  ;;  %v142_v25 = vld [vmem:[%s713_s2 + $0x90] sm:$0xff]  ;;  %v177_v33 = vmul.f32 %v141_v23, %v487_v3  ;;  %v159_v23 = vld [vmem:[%s713_s2 + $0x118] sm:$0xff] }
  0x83   :  { %v179_v34 = vmul.f32 %v143_v24, %v482_v2  ;;  %v176_v35 = vmul.f32 %v140_v22, %v475_v1  ;;  %v157_v24 = vld [vmem:[%s713_s2 + $0x108] sm:$0xff] }
  0x84   :  { %v49_v40 = vpop.permute.xlu1 %48  ;;  %v47_v41 = vpop.permute.xlu0 %46  ;;  %v395_v42 = vpack.c.bf16 %v164_v36, %v160_v28  ;;  %v409_v43 = vpack.c.bf16 %v167_v39, %v163_v38  ;;  %v411_v44 = vpack.c.bf16 %v166_v37, %v162_v32  ;;  %v147_v28 = vld [vmem:[%s713_s2 + $0xb8] sm:$0xff]  ;;  %v178_v36 = vmul.f32 %v142_v25, %v470_v0  ;;  %v158_v25 = vld [vmem:[%s713_s2 + $0x110] sm:$0xff] }
  0x85   :  { %v57_v48 = vsel %vm54_vm2, %v47_v41, %v49_v40 }
  0x86   :  { %396 = vmatpush1.bf16.msra.mxu0 %v395_v42  ;;  %410 = vmatprep.subr.bf16.mxu1 %v409_v43  ;;  %v169_v55 = vmul.f32 %v133_v47, %v57_v48 }
  0x87   :  { %412 = vmatpush1.bf16.msra.mxu1 %v411_v44 }
  0x88   :  { %v53_v45 = vpop.permute.xlu1 %52  ;;  %v51_v46 = vpop.permute.xlu0 %50 }
  0x89   :  { %v58_v53 = vsel %vm54_vm2, %v53_v45, %v47_v41  ;;  %v56_v58 = vsel %vm54_vm2, %v49_v40, %v51_v46  ;;  %v55_v60 = vsel %vm54_vm2, %v51_v46, %v53_v45 }
  0x8a   :  { %v168_v4 = vmul.f32 %v132_v52, %v58_v53  ;;  %v170_v9 = vmul.f32 %v134_v56, %v56_v58  ;;  %v171_v13 = vmul.f32 %v135_v57, %v55_v60  ;;  %v149_v52 = vld [vmem:[%s713_s2 + $0xc8] sm:$0xff]  ;;  %v155_v58 = vld [vmem:[%s713_s2 + $0xf8] sm:$0xff]  ;;  %v154_v60 = vld [vmem:[%s713_s2 + $0xf0] sm:$0xff] }
  0x8c   :  { %v62_v50 = vpop.permute.xlu1 %61  ;;  %v60_v51 = vpop.permute.xlu0 %59 }
  0x8d   :  { %v70_v54 = vsel %vm67_vm3, %v60_v51, %v62_v50 }
  0x8e   :  { %v173_v59 = vmul.f32 %v137_v49, %v70_v54  ;;  %v150_v54 = vld [vmem:[%s713_s2 + $0xd0] sm:$0xff] }
  0x90   :  { %v66_v5 = vpop.permute.xlu1 %65  ;;  %v64_v6 = vpop.permute.xlu0 %63  ;;  %v397_v7 = vpack.c.bf16 %v173_v59, %v169_v55  ;;  %v152_v55 = vld [vmem:[%s713_s2 + $0xe0] sm:$0xff]  ;;  %v153_v59 = vld [vmem:[%s713_s2 + $0xe8] sm:$0xff] }
  0x91   :  { %v71_v10 = vsel %vm67_vm3, %v66_v5, %v60_v51  ;;  %v68_v11 = vsel %vm67_vm3, %v64_v6, %v66_v5  ;;  %v69_v12 = vsel %vm67_vm3, %v62_v50, %v64_v6  ;;  %v151_v50 = vld [vmem:[%s713_s2 + $0xd8] sm:$0xff] }
  0x92   :  { %v172_v14 = vmul.f32 %v136_v61, %v71_v10  ;;  %v174_v15 = vmul.f32 %v138_v62, %v69_v12  ;;  %v175_v16 = vmul.f32 %v139_v63, %v68_v11  ;;  %398 = vmatprep.subr.bf16.mxu0 %v397_v7  ;;  %v148_v61 = vld [vmem:[%s713_s2 + $0xc0] sm:$0xff] }
  0x94   :  { %v75_v17 = vpop.permute.xlu1 %74  ;;  %v73_v18 = vpop.permute.xlu0 %72  ;;  %v399_v19 = vpack.c.bf16 %v172_v14, %v168_v4  ;;  %v413_v20 = vpack.c.bf16 %v175_v16, %v171_v13  ;;  %v415_v21 = vpack.c.bf16 %v174_v15, %v170_v9 }
  0x95   :  { %v83_v27 = vsel %vm80_vm4, %v73_v18, %v75_v17 }
  0x96   :  { %400 = vmatpush1.bf16.msra.mxu0 %v399_v19  ;;  %414 = vmatprep.subr.bf16.mxu1 %v413_v20  ;;  %v180_v37 = vmul.f32 %v144_v26, %v83_v27  ;;  %v156_v26 = vld [vmem:[%s713_s2 + $0x100] sm:$0xff] }
  0x97   :  { %416 = vmatpush1.bf16.msra.mxu1 %v415_v21 }
  0x98   :  { %v79_v31 = vpop.permute.xlu1 %78  ;;  %v77_v32 = vpop.permute.xlu0 %76  ;;  %v403_v46 = vpack.c.bf16 %v180_v37, %v176_v35  ;;  %v196_v37 = vld [vmem:[%s714_s1] sm:$0xff] }
  0x99   :  { %v84_v38 = vsel %vm80_vm4, %v79_v31, %v73_v18  ;;  %v81_v39 = vsel %vm80_vm4, %v77_v32, %v79_v31  ;;  %v82_v40 = vsel %vm80_vm4, %v75_v17, %v77_v32 }
  0x9a   :  { %v183_v41 = vmul.f32 %v147_v28, %v84_v38  ;;  %v181_v42 = vmul.f32 %v145_v29, %v82_v40  ;;  %v182_v43 = vmul.f32 %v146_v30, %v81_v39 }
  0x9c   :  { %v88_v3 = vpop.permute.xlu1 %87  ;;  %v86_v44 = vpop.permute.xlu0 %85  ;;  %v401_v2 = vpack.c.bf16 %v181_v42, %v177_v33  ;;  %v417_v45 = vpack.c.bf16 %v183_v41, %v179_v34  ;;  %v419_v1 = vpack.c.bf16 %v182_v43, %v178_v36 }
  0x9d   :  { %v96_v62 = vsel %vm93_vm6, %v86_v44, %v88_v3 }
  0x9e   :  { %402 = vmatprep.subr.bf16.mxu0 %v401_v2  ;;  %418 = vmatprep.subr.bf16.mxu1 %v417_v45  ;;  %v184_v16 = vmul.f32 %v148_v61, %v96_v62 }
  0x9f   :  { %404 = vmatpush1.bf16.msra.mxu0 %v403_v46  ;;  %420 = vmatpush1.bf16.msra.mxu1 %v419_v1 }
  0xa0   :  { %v92_v0 = vpop.permute.xlu1 %91  ;;  %v90_v47 = vpop.permute.xlu0 %89 }
  0xa1   :  { %v97_v51 = vsel %vm93_vm6, %v92_v0, %v86_v44  ;;  %v95_v53 = vsel %vm93_vm6, %v88_v3, %v90_v47  ;;  %v94_v57 = vsel %vm93_vm6, %v90_v47, %v92_v0 }
  0xa2   :  { %v187_v63 = vmul.f32 %v151_v50, %v97_v51  ;;  %v185_v4 = vmul.f32 %v149_v52, %v95_v53  ;;  %v186_v12 = vmul.f32 %v150_v54, %v94_v57 }
  0xa4   :  { %v101_v48 = vpop.permute.xlu1 %100  ;;  %v99_v49 = vpop.permute.xlu0 %98 }
  0xa5   :  { %v109_v56 = vsel %vm106_vm5, %v99_v49, %v101_v48 }
  0xa6   :  { %v188_v7 = vmul.f32 %v152_v55, %v109_v56 }
  0xa8   :  { %v105_v5 = vpop.permute.xlu1 %104  ;;  %v103_v6 = vpop.permute.xlu0 %102  ;;  %v407_v22 = vpack.c.bf16 %v188_v7, %v184_v16 }
  0xa9   :  { %v110_v9 = vsel %vm106_vm5, %v105_v5, %v99_v49  ;;  %v107_v10 = vsel %vm106_vm5, %v103_v6, %v105_v5  ;;  %v108_v11 = vsel %vm106_vm5, %v101_v48, %v103_v6 }
  0xaa   :  { %v191_v13 = vmul.f32 %v155_v58, %v110_v9  ;;  %v189_v14 = vmul.f32 %v153_v59, %v108_v11  ;;  %v190_v15 = vmul.f32 %v154_v60, %v107_v10 }
  0xac   :  { %v114_v17 = vpop.permute.xlu1 %113  ;;  %v112_v18 = vpop.permute.xlu0 %111  ;;  %v405_v19 = vpack.c.bf16 %v189_v14, %v185_v4  ;;  %v421_v20 = vpack.c.bf16 %v191_v13, %v187_v63  ;;  %v423_v21 = vpack.c.bf16 %v190_v15, %v186_v12 }
  0xad   :  { %v122_v27 = vsel %vm119_vm7, %v112_v18, %v114_v17 }
  0xae   :  { %406 = vmatprep.subr.bf16.mxu0 %v405_v19  ;;  %422 = vmatprep.subr.bf16.mxu1 %v421_v20  ;;  %v192_v36 = vmul.f32 %v156_v26, %v122_v27 }
  0xaf   :  { %408 = vmatpush1.bf16.msra.mxu0 %v407_v22  ;;  %424 = vmatpush1.bf16.msra.mxu1 %v423_v21 }
  0xb0   :  { %v118_v28 = vpop.permute.xlu1 %117  ;;  %v116_v29 = vpop.permute.xlu0 %115 }
  0xb1   :  { %v123_v30 = vsel %vm119_vm7, %v118_v28, %v112_v18  ;;  %v120_v31 = vsel %vm119_vm7, %v116_v29, %v118_v28  ;;  %v121_v32 = vsel %vm119_vm7, %v114_v17, %v116_v29 }
  0xb2   :  { %v195_v33 = vmul.f32 %v159_v23, %v123_v30  ;;  %v193_v34 = vmul.f32 %v157_v24, %v121_v32  ;;  %v194_v35 = vmul.f32 %v158_v25, %v120_v31 }
  0xb4   :  { %217 = vmatprep.subr.mxu0 %v193_v34  ;;  %288 = vmatprep.subr.mxu1 %v195_v33 }
  0xb5   :  { %218 = vmatpush1.msra.mxu0 %v192_v36  ;;  %289 = vmatpush1.msra.mxu1 %v194_v35 }
  0xb6   :  { %389 = vmatmul.mubr.msk.f32.vlgmr.msra.gmra.mrb[0].mxu0 %vm197_vm8, %v196_v37  ;;  %390 = vmatmul.mubr.msk.f32.vlgmr.msra.gmra.mrb[0].mxu1 %vm197_vm8, %v196_v37 }
 0x189   :  { %v267_v38 = vpop.f32.mrb[0].mxu0  ;;  %v338_v39 = vpop.f32.mrb[0].mxu1 }
 0x18a   :  { %v269_v40 = vpop.f32.mrb[1].mxu0  ;;  %v340_v8 = vpop.f32.mrb[1].mxu1 }
 0x18b   :  { %v343_v41 = vadd.f32 %v269_v40, %v267_v38  ;;  %v364_v42 = vadd.f32 %v340_v8, %v338_v39 }
 0x18d   :  { %365 = vadd.xlane.f32.xlu1 %v364_v42  ;;  %344 = vadd.xlane.f32.xlu0 %v343_v41 }
 0x21a   :  { %v366_v43 = vpop.xlane.xlu1 %365  ;;  %v345_v3 = vpop.xlane.xlu0 %344 }
 0x21b   :  { %v367_v44 = vmul.f32 0.00390625, %v366_v43  ;;  %v347_v2 = vmul.f32 0.00390625, %v345_v3 }
 0x21d   :  { %v368_v45 = vsub.f32 %v338_v39, %v367_v44  ;;  %v369_v1 = vsub.f32 %v340_v8, %v367_v44  ;;  %v348_v46 = vsub.f32 %v267_v38, %v347_v2  ;;  %v349_v0 = vsub.f32 %v269_v40, %v347_v2 }
 0x21f   :  { %v350_v47 = vmul.f32 %v348_v46, %v348_v46  ;;  %v351_v48 = vmul.f32 %v349_v0, %v349_v0  ;;  %v370_v50 = vmul.f32 %v368_v45, %v368_v45  ;;  %v371_v51 = vmul.f32 %v369_v1, %v369_v1 }
 0x221   :  { %v352_v49 = vadd.f32 %v351_v48, %v350_v47  ;;  %v372_v52 = vadd.f32 %v371_v51, %v370_v50 }
 0x223   :  { %353 = vadd.xlane.f32.xlu0 %v352_v49 }
 0x227   :  { %373 = vadd.xlane.f32.xlu0 %v372_v52 }
 0x2b0   :  { %v354_v53 = vpop.xlane.xlu0 %353 }
 0x2b1   :  { %v355_v54 = vmul.f32 0.00390625, %v354_v53 }
 0x2b3   :  { %v356_v55 = vadd.f32 1e-05, %v355_v54 }
 0x2b4   :  { %v374_v56 = vpop.xlane.xlu0 %373 }
 0x2b5   :  { %434 = vrsqrt.f32 %v356_v55  ;;  %v375_v57 = vmul.f32 0.00390625, %v374_v56 }
 0x2b7   :  { %v376_v58 = vadd.f32 1e-05, %v375_v57 }
 0x2b9   :  { %436 = vrsqrt.f32 %v376_v58 }
 0x2bf   :  { %v435_v59 = vpop.eup %434 }
 0x2c0   :  { %v358_v60 = vmul.f32 %v435_v59, %v348_v46  ;;  %v359_v61 = vmul.f32 %v435_v59, %v349_v0 }
 0x2c2   :  { %v360_v62 = vmax.f32 %v358_v60, 0.0  ;;  %v361_v63 = vmax.f32 %v359_v61, 0.0 }
 0x2c3   :  { %v437_v4 = vpop.eup %436 }
 0x2c4   :  { %362 = vst [vmem:[%s715_s3] sm:$0xff] %v360_v62  ;;  %363 = vst [vmem:[%s715_s3 + $0x8] sm:$0xff] %v361_v63  ;;  %v378_v5 = vmul.f32 %v437_v4, %v368_v45  ;;  %v379_v6 = vmul.f32 %v437_v4, %v369_v1 }
 0x2c6   :  { %v380_v7 = vmax.f32 %v378_v5, 0.0  ;;  %v381_v9 = vmax.f32 %v379_v6, 0.0 }
 0x2c8   :  { %391 = vst [vmem:[%s715_s3 + $0x10] sm:$0xff] %v380_v7  ;;  %392 = vst [vmem:[%s715_s3 + $0x18] sm:$0xff] %v381_v9 }

</bundles_post_ra>
